<compile_context>
chip_gen: v7x
topology: tpu7x:2x2x1
jax: 0.10.0
libtpu: 0.0.40
codegen_flags: <defaults>
</compile_context>

<pallas_src>
import functools

import jax
import jax.numpy as jnp
import numpy as np
from jax.experimental import pallas as pl
from jax.experimental.pallas import tpu as pltpu


class Config:
    hidden_dim = 32
    max_len = 8
    ffn_dim = 64
    group = 2
    dropout = 0.0   # eval semantics -> Dropout is identity
    bias = 1


def _round_up(n, m):
    return ((n + m - 1) // m) * m


# ----------------------------- in-kernel math --------------------------------
def _erf(z):
    # TODO(synk): Mosaic has no native erf lowering; torch's exact GELU (erf) is
    # reproduced with the Abramowitz-Stegun 7.1.26 polynomial (max abs err
    # ~1.5e-7, float32-exact for the 1e-5 test tolerance).
    a1, a2, a3, a4, a5 = 0.254829592, -0.284496736, 1.421413741, -1.453152027, 1.061405429
    p = 0.3275911
    s = jnp.where(z >= 0, 1.0, -1.0)
    za = jnp.abs(z)
    t = 1.0 / (1.0 + p * za)
    poly = t * (a1 + t * (a2 + t * (a3 + t * (a4 + t * a5))))
    return s * (1.0 - poly * jnp.exp(-(za * za)))


def _gelu_exact(x):
    return 0.5 * x * (1.0 + _erf(x * 0.7071067811865476))


# ----------------------------- kernel -----------------------------------------
def _grouped_ffn_kernel(x_ref, w1_ref, b1_ref, w2_ref, b2_ref, o_ref, *, use_bf16):
    # x_ref: (row_tile, D) tile; w1/w2 are block-diagonal (D, G*mid)/(G*mid, D)
    # resident VMEM blocks shared across all grid steps.
    x = x_ref[...]
    w1 = w1_ref[...]
    w2 = w2_ref[...]
    if use_bf16:
        x = x.astype(jnp.bfloat16)
        w1 = w1.astype(jnp.bfloat16)
        w2 = w2.astype(jnp.bfloat16)

    h = jnp.dot(x, w1, preferred_element_type=jnp.float32) + b1_ref[...]
    h = _gelu_exact(h)
    # TODO(synk): Dropout with p > 0 (training) is not implemented; eval / p=0
    # semantics make it an identity here.
    if use_bf16:
        h = h.astype(jnp.bfloat16)
    o_ref[...] = (jnp.dot(h, w2, preferred_element_type=jnp.float32)
                  + b2_ref[...]).astype(o_ref.dtype)


# ----------------------------- wrapper -----------------------------------------
def grouped_ffn(x, w1, b1, w2, b2, *, group, row_tile=512, use_bf16=False):
    """x: (B, S, D) float32; w1: (in_dim, mid_dim); w2: (mid_dim, in_dim);
    biases (1, mid_dim) / (1, in_dim).  Weights are shared across groups.
    Returns (B, S, D)."""
    B, S, D = x.shape
    in_dim = D // group
    mid_dim = w1.shape[1]
    gm = group * mid_dim
    assert w1.shape == (in_dim, mid_dim) and w2.shape == (mid_dim, in_dim)

    # Host-side (XLA) one-time packing: block-diagonal weights + tiled biases.
    # Exact because w1/b1/w2/b2 are shared across all groups.
    eye = jnp.eye(group, dtype=w1.dtype)
    w1_bd = jnp.kron(eye, w1)                              # (D, G*mid)
    w2_bd = jnp.kron(eye, w2)                              # (G*mid, D)
    b1_t = jnp.tile(b1.reshape(1, mid_dim), (1, group))    # (1, G*mid)
    b2_t = jnp.tile(b2.reshape(1, in_dim), (1, group))     # (1, D)

    # Row tiling over B*S (groups are folded into the lane axis).
    N = B * S
    rt = min(row_tile, _round_up(N, 8))
    rt = _round_up(rt, 8)
    n_pad = _round_up(N, rt)

    x2d = x.reshape(N, D)
    if n_pad != N:
        x2d = jnp.pad(x2d, ((0, n_pad - N), (0, 0)))

    grid = (n_pad // rt,)

    # VMEM live-set estimate (f32): double-buffered x/out tiles, resident
    # weights/biases, intermediate h.  Keep an explicit, v7x-safe limit.
    itemsize = 4
    vmem_est = itemsize * (2 * rt * D            # x tile, double-buffered
                           + 2 * rt * D          # out tile, double-buffered
                           + 2 * (D * gm + gm * D + gm + D)   # params (+headroom)
                           + 2 * rt * gm)        # f32 intermediate h + slack
    vmem_limit = int(min(max(2 * vmem_est, 8 * 1024 * 1024), 48 * 1024 * 1024))

    out2d = pl.pallas_call(
        functools.partial(_grouped_ffn_kernel, use_bf16=use_bf16),
        out_shape=jax.ShapeDtypeStruct((n_pad, D), x.dtype),
        grid_spec=pltpu.PrefetchScalarGridSpec(
            num_scalar_prefetch=0,
            grid=grid,
            in_specs=[
                pl.BlockSpec((rt, D), lambda i: (i, 0)),    # x tile (pipelined)
                pl.BlockSpec((D, gm), lambda i: (0, 0)),    # W1 block-diag (resident)
                pl.BlockSpec((1, gm), lambda i: (0, 0)),    # b1 (resident)
                pl.BlockSpec((gm, D), lambda i: (0, 0)),    # W2 block-diag (resident)
                pl.BlockSpec((1, D), lambda i: (0, 0)),     # b2 (resident)
            ],
            out_specs=pl.BlockSpec((rt, D), lambda i: (i, 0)),
        ),
        compiler_params=pltpu.CompilerParams(
            dimension_semantics=("parallel",),              # v7x: shard rows over 2 TCs
            vmem_limit_bytes=vmem_limit,
        ),
    )(x2d, w1_bd, b1_t, w2_bd, b2_t)

    if n_pad != N:
        out2d = out2d[:N]
    return out2d.reshape(B, S, D)


# ----------------------------- driver -----------------------------------------
if __name__ == "__main__":
    cfg = Config()
    B = 2
    S = cfg.max_len
    D = cfg.hidden_dim
    G = cfg.group
    in_dim = D // G
    mid_dim = cfg.ffn_dim // G

    k0, k1, k2, k3, k4 = jax.random.split(jax.random.PRNGKey(0), 5)
    x = jax.random.normal(k0, (B, S, D), jnp.float32)
    # init_weights(): nn.init.normal_(param, mean=0, std=0.02) for every parameter
    w1 = 0.02 * jax.random.normal(k1, (in_dim, mid_dim), jnp.float32)
    b1 = 0.02 * jax.random.normal(k2, (1, mid_dim), jnp.float32)
    w2 = 0.02 * jax.random.normal(k3, (mid_dim, in_dim), jnp.float32)
    b2 = 0.02 * jax.random.normal(k4, (1, in_dim), jnp.float32)

    out = grouped_ffn(x, w1, b1, w2, b2, group=G)
    out = jax.block_until_ready(out)
    assert out.shape == (B, S, D)

    # Pure-JAX reference mirroring the PyTorch forward (exact GELU, dropout=identity),
    # evaluated group-wise to independently validate the block-diagonal packing.
    xg = x.reshape(B, S, G, in_dim)
    ref = jax.nn.gelu(xg @ w1 + b1[0], approximate=False) @ w2 + b2[0]
    ref = ref.reshape(B, S, D)
    np.testing.assert_allclose(np.asarray(out), np.asarray(ref), atol=1e-5, rtol=1e-5)

    print("KERNEL_OK")
</pallas_src>

<mosaic_0001>
module attributes {stable_mosaic.version = 11 : i64} {
  func.func @_grouped_ffn_kernel(%arg0: i32, %arg1: memref<16x32xf32, #tpu.memory_space<vmem>>, %arg2: memref<32x64xf32, #tpu.memory_space<vmem>>, %arg3: memref<1x64xf32, #tpu.memory_space<vmem>>, %arg4: memref<64x32xf32, #tpu.memory_space<vmem>>, %arg5: memref<1x32xf32, #tpu.memory_space<vmem>>, %arg6: memref<16x32xf32, #tpu.memory_space<vmem>>) attributes {dimension_semantics = [#tpu.dimension_semantics<parallel>], iteration_bounds = array<i64: 1>, scalar_prefetch = 0 : i64, scratch_operands = 0 : i64, tpu.core_type = #tpu.core_type<tc>, window_params = [{transform_indices = @transform_0, window_bounds = array<i64: 16, 32>}, {pipeline_mode = #tpu.pipeline_mode<synchronous>, transform_indices = @transform_1, window_bounds = array<i64: 32, 64>}, {pipeline_mode = #tpu.pipeline_mode<synchronous>, transform_indices = @transform_2, window_bounds = array<i64: 1, 64>}, {pipeline_mode = #tpu.pipeline_mode<synchronous>, transform_indices = @transform_3, window_bounds = array<i64: 64, 32>}, {pipeline_mode = #tpu.pipeline_mode<synchronous>, transform_indices = @transform_4, window_bounds = array<i64: 1, 32>}, {transform_indices = @transform_5, window_bounds = array<i64: 16, 32>}]} {
    %c0 = arith.constant 0 : index
    %c0_0 = arith.constant 0 : index
    %0 = vector.load %arg1[%c0, %c0_0] : memref<16x32xf32, #tpu.memory_space<vmem>>, vector<16x32xf32>
    %c0_1 = arith.constant 0 : index
    %c0_2 = arith.constant 0 : index
    %1 = vector.load %arg2[%c0_1, %c0_2] : memref<32x64xf32, #tpu.memory_space<vmem>>, vector<32x64xf32>
    %c0_3 = arith.constant 0 : index
    %c0_4 = arith.constant 0 : index
    %2 = vector.load %arg4[%c0_3, %c0_4] : memref<64x32xf32, #tpu.memory_space<vmem>>, vector<64x32xf32>
    %cst = arith.constant dense<0.000000e+00> : vector<16x64xf32>
    %3 = tpu.matmul %0, %1, %cst {dimension_numbers = #tpu.dot_dimension_numbers<[1], [0], [0], [1], [0, 0, 1, 1], [], []>} : vector<16x32xf32>, vector<32x64xf32>, vector<16x64xf32> -> vector<16x64xf32>
    %c0_5 = arith.constant 0 : index
    %c0_6 = arith.constant 0 : index
    %4 = vector.load %arg3[%c0_5, %c0_6] : memref<1x64xf32, #tpu.memory_space<vmem>>, vector<1x64xf32>
    %5 = vector.broadcast %4 : vector<1x64xf32> to vector<16x64xf32>
    %6 = arith.addf %3, %5 : vector<16x64xf32>
    %cst_7 = arith.constant 5.000000e-01 : f32
    %7 = vector.broadcast %cst_7 : f32 to vector<16x64xf32>
    %8 = arith.mulf %7, %6 : vector<16x64xf32>
    %cst_8 = arith.constant 0.707106769 : f32
    %9 = vector.broadcast %cst_8 : f32 to vector<16x64xf32>
    %10 = arith.mulf %6, %9 : vector<16x64xf32>
    %cst_9 = arith.constant 0.000000e+00 : f32
    %11 = vector.broadcast %cst_9 : f32 to vector<16x64xf32>
    %12 = arith.cmpf oge, %10, %11 : vector<16x64xf32>
    %cst_10 = arith.constant 1.000000e+00 : f32
    %cst_11 = arith.constant -1.000000e+00 : f32
    %13 = vector.broadcast %cst_10 : f32 to vector<16x64xf32>
    %14 = vector.broadcast %cst_11 : f32 to vector<16x64xf32>
    %15 = arith.select %12, %13, %14 : vector<16x64xi1>, vector<16x64xf32>
    %16 = math.absf %10 : vector<16x64xf32>
    %cst_12 = arith.constant 0.327591091 : f32
    %17 = vector.broadcast %cst_12 : f32 to vector<16x64xf32>
    %18 = arith.mulf %17, %16 : vector<16x64xf32>
    %cst_13 = arith.constant 1.000000e+00 : f32
    %19 = vector.broadcast %cst_13 : f32 to vector<16x64xf32>
    %20 = arith.addf %19, %18 : vector<16x64xf32>
    %cst_14 = arith.constant 1.000000e+00 : f32
    %21 = vector.broadcast %cst_14 : f32 to vector<16x64xf32>
    %22 = arith.divf %21, %20 : vector<16x64xf32>
    %cst_15 = arith.constant 1.06140542 : f32
    %23 = vector.broadcast %cst_15 : f32 to vector<16x64xf32>
    %24 = arith.mulf %22, %23 : vector<16x64xf32>
    %cst_16 = arith.constant -1.45315206 : f32
    %25 = vector.broadcast %cst_16 : f32 to vector<16x64xf32>
    %26 = arith.addf %25, %24 : vector<16x64xf32>
    %27 = arith.mulf %22, %26 : vector<16x64xf32>
    %cst_17 = arith.constant 1.42141378 : f32
    %28 = vector.broadcast %cst_17 : f32 to vector<16x64xf32>
    %29 = arith.addf %28, %27 : vector<16x64xf32>
    %30 = arith.mulf %22, %29 : vector<16x64xf32>
    %cst_18 = arith.constant -0.284496725 : f32
    %31 = vector.broadcast %cst_18 : f32 to vector<16x64xf32>
    %32 = arith.addf %31, %30 : vector<16x64xf32>
    %33 = arith.mulf %22, %32 : vector<16x64xf32>
    %cst_19 = arith.constant 0.254829586 : f32
    %34 = vector.broadcast %cst_19 : f32 to vector<16x64xf32>
    %35 = arith.addf %34, %33 : vector<16x64xf32>
    %36 = arith.mulf %22, %35 : vector<16x64xf32>
    %37 = arith.mulf %16, %16 : vector<16x64xf32>
    %cst_20 = arith.constant 0.000000e+00 : f32
    %38 = vector.broadcast %cst_20 : f32 to vector<16x64xf32>
    %39 = arith.subf %38, %37 : vector<16x64xf32>
    %40 = math.exp %39 : vector<16x64xf32>
    %41 = arith.mulf %36, %40 : vector<16x64xf32>
    %cst_21 = arith.constant 1.000000e+00 : f32
    %42 = vector.broadcast %cst_21 : f32 to vector<16x64xf32>
    %43 = arith.subf %42, %41 : vector<16x64xf32>
    %44 = arith.mulf %15, %43 : vector<16x64xf32>
    %cst_22 = arith.constant 1.000000e+00 : f32
    %45 = vector.broadcast %cst_22 : f32 to vector<16x64xf32>
    %46 = arith.addf %45, %44 : vector<16x64xf32>
    %47 = arith.mulf %8, %46 : vector<16x64xf32>
    %cst_23 = arith.constant dense<0.000000e+00> : vector<16x32xf32>
    %48 = tpu.matmul %47, %2, %cst_23 {dimension_numbers = #tpu.dot_dimension_numbers<[1], [0], [0], [1], [0, 0, 1, 1], [], []>} : vector<16x64xf32>, vector<64x32xf32>, vector<16x32xf32> -> vector<16x32xf32>
    %c0_24 = arith.constant 0 : index
    %c0_25 = arith.constant 0 : index
    %49 = vector.load %arg5[%c0_24, %c0_25] : memref<1x32xf32, #tpu.memory_space<vmem>>, vector<1x32xf32>
    %50 = vector.broadcast %49 : vector<1x32xf32> to vector<16x32xf32>
    %51 = arith.addf %48, %50 : vector<16x32xf32>
    %c0_26 = arith.constant 0 : index
    %c0_27 = arith.constant 0 : index
    %52 = vector.load %arg6[%c0_26, %c0_27] : memref<16x32xf32, #tpu.memory_space<vmem>>, vector<16x32xf32>
    tpu.vector_store %arg6[%c0_26, %c0_27], %51 {strides = array<i32>} : memref<16x32xf32, #tpu.memory_space<vmem>>, vector<16x32xf32>,
    return
  }
  func.func @transform_0(%arg0: i32) -> (i32, i32) {
    %c0_i32 = arith.constant 0 : i32
    %c0_i32_0 = arith.constant 0 : i32
    return %arg0, %c0_i32 : i32, i32
  }
  func.func @transform_1(%arg0: i32) -> (i32, i32) {
    %c0_i32 = arith.constant 0 : i32
    %c0_i32_0 = arith.constant 0 : i32
    %c0_i32_1 = arith.constant 0 : i32
    return %c0_i32, %c0_i32_0 : i32, i32
  }
  func.func @transform_2(%arg0: i32) -> (i32, i32) {
    %c0_i32 = arith.constant 0 : i32
    %c0_i32_0 = arith.constant 0 : i32
    %c0_i32_1 = arith.constant 0 : i32
    return %c0_i32, %c0_i32_0 : i32, i32
  }
  func.func @transform_3(%arg0: i32) -> (i32, i32) {
    %c0_i32 = arith.constant 0 : i32
    %c0_i32_0 = arith.constant 0 : i32
    %c0_i32_1 = arith.constant 0 : i32
    return %c0_i32, %c0_i32_0 : i32, i32
  }
  func.func @transform_4(%arg0: i32) -> (i32, i32) {
    %c0_i32 = arith.constant 0 : i32
    %c0_i32_0 = arith.constant 0 : i32
    %c0_i32_1 = arith.constant 0 : i32
    return %c0_i32, %c0_i32_0 : i32, i32
  }
  func.func @transform_5(%arg0: i32) -> (i32, i32) {
    %c0_i32 = arith.constant 0 : i32
    %c0_i32_0 = arith.constant 0 : i32
    return %arg0, %c0_i32 : i32, i32
  }
}

</mosaic_0001>

<bundles_post_ra>
// kernel: tpu_custom_call.1
= control target key start
LH: loop header
LB: loop body
LE: loop exit
PB: predicated region body
PF: predicated region fallthrough
CT: control target
= control target key end

     0   :  { %vm42_vm0 = vcmask 261120   ;;  %s495_s0 = inlined_call_operand.vmem [shape: f32[16,32], index: 0, kind: input, shape index: {}]   ;;  %s496_s1 = inlined_call_operand.vmem [shape: f32[32,64], index: 1, kind: input, shape index: {}]   ;;  %s497_s2 = inlined_call_operand.vmem [shape: f32[1,64], index: 2, kind: input, shape index: {}]   ;;  %s498_s3 = inlined_call_operand.vmem [shape: f32[64,32], index: 3, kind: input, shape index: {}]   ;;  %s499_s4 = inlined_call_operand.vmem [shape: f32[1,32], index: 4, kind: input, shape index: {}]   ;;  %s500_s5 = inlined_call_operand.hbm [shape: f32[16,32], index: 5, kind: output, shape index: {}]  }
   0x1   :  { %v23_v0 = vld [vmem:[%s496_s1] sm:$0xff]  ;;  %v24_v1 = vld [vmem:[%s496_s1 + $0x8] sm:$0xff]  ;;  %v25_v2 = vld [vmem:[%s496_s1 + $0x10] sm:$0xff] }
   0x2   :  { %v337_v3 = vpack.c.bf16 %v24_v1, %v23_v0  ;;  %v26_v4 = vld [vmem:[%s496_s1 + $0x18] sm:$0xff]  ;;  %v21_v5 = vld [vmem:[%s495_s0] sm:$0xff] }
   0x3   :  { %v341_v6 = vpack.c.bf16 %v26_v4, %v25_v2  ;;  %315 = vmatprep.mubr.msk.f32.mxu0 %vm42_vm0, %v21_v5 }
   0x4   :  { %10 = vsyncpa [#allocation3], 0  ;;  %338 = vmatprep.subr.bf16.mxu0 %v337_v3  ;;  %v22_v7 = vld [vmem:[%s495_s0 + $0x8] sm:$0xff]  ;;  %v27_v8 = vld [vmem:[%s498_s3] sm:$0xff]  ;;  %v397_v0 = vmov -1.0   ;;  %vm185_vm3 = vcmask 523264  }
   0x5   :  { %340 = vmatpush3.bf16.msra.mxu0 %v337_v3  ;;  %v28_v9 = vld [vmem:[%s498_s3 + $0x8] sm:$0xff]  ;;  %v29_v11 = vld [vmem:[%s498_s3 + $0x10] sm:$0xff]  ;;  %v30_v12 = vld [vmem:[%s498_s3 + $0x18] sm:$0xff]  ;;  %s398_s21 = smov [#allocation2]  }
   0x6   :  { %342 = vmatprep.subr.bf16.mxu0 %v341_v6  ;;  %v345_v10 = vpack.c.bf16 %v28_v9, %v27_v8  ;;  %v349_v13 = vpack.c.bf16 %v30_v12, %v29_v11  ;;  %v31_v14 = vld [vmem:[%s498_s3 + $0x20] sm:$0xff]  ;;  %v32_v15 = vld [vmem:[%s498_s3 + $0x28] sm:$0xff]  ;;  %v33_v17 = vld [vmem:[%s498_s3 + $0x30] sm:$0xff]  ;;  %s274_s22 = sshll.u32 %s398_s21, 4  ;;  %s275_s22 = int_to_ptr.vmem [resolvable:$true] %s274_s22 }
   0x7   :  { %v353_v16 = vpack.c.bf16 %v32_v15, %v31_v14  ;;  %v34_v18 = vld [vmem:[%s498_s3 + $0x38] sm:$0xff]  ;;  %v285_v20 = vld [vmem:[%s497_s2] ss:$0 sm:$0xff]  ;;  %s373_s23 = scalar_lea.vmem %s275_s22, 256  ;;  %p378_p1 = scmp.lt.s32.totalorder %s275_s22, %s275_s22 }
   0x8   :  { %346 = vmatprep.subr.bf16.mxu1 %v345_v10  ;;  %v357_v19 = vpack.c.bf16 %v34_v18, %v33_v17  ;;  %v288_v12 = vld [vmem:[%s499_s4] ss:$0 sm:$0xff]  ;;  %p374_p0 = scmp.ne.s32.totalorder %s275_s22, %s373_s23  ;;  %p379_p2 = scmp.lt.s32.totalorder %s373_s23, %s373_s23 }
   0x9   :  { %344 = vmatpush3.bf16.msra.mxu0 %v341_v6  ;;  %348 = vmatpush3.bf16.msra.mxu1 %v345_v10 }
   0xa   :  { %350 = vmatprep.subr.bf16.mxu1 %v349_v13  ;;  %p380_p3 = por %p379_p2, %p378_p1 }
   0xc   :  { %316 = vmatmul.mubr.msk.f32.vlgmr.msra.gmra.mrb[0].mxu0 %vm42_vm0, %v22_v7  ;;  %p381_p4 = pnand %p380_p3, %p374_p0 }
   0xd   :  { %352 = vmatpush3.bf16.msra.mxu1 %v349_v13 }
   0xe   :  { %354 = vmatprep.subr.bf16.mxu1 %v353_v16 }
  0x11   :  { %356 = vmatpush3.bf16.msra.mxu1 %v353_v16 }
  0x12   :  { %358 = vmatprep.subr.bf16.mxu1 %v357_v19 }
  0x15   :  { %360 = vmatpush3.bf16.msra.mxu1 %v357_v19 }
  0xdf   :  { %v317_v21 = vpop.f32.mrb[0].mxu0 }
  0xe0   :  { %v121_v22 = vadd.f32 %v317_v21, %v285_v20  ;;  %v115_v23 = vpop.f32.mrb[1].mxu0 }
  0xe1   :  { %v116_v24 = vadd.f32 %v285_v20, %v115_v23 }
  0xe2   :  { %v127_v25 = vmul.f32 0.70710677, %v121_v22  ;;  %v125_v9 = vmul.f32 0.5, %v121_v22 }
  0xe3   :  { %v126_v26 = vmul.f32 0.70710677, %v116_v24  ;;  %v124_v7 = vmul.f32 0.5, %v116_v24 }
  0xe4   :  { %v133_v27 = vand.u32 2147483647, %v127_v25  ;;  %vm129_vm1 = vcmp.ge.f32.partialorder %v127_v25, 0.0 }
  0xe5   :  { %v132_v28 = vand.u32 2147483647, %v126_v26  ;;  %vm128_vm2 = vcmp.ge.f32.partialorder %v126_v26, 0.0  ;;  %v131_v1 = vsel %vm129_vm1, 1.0, %v397_v0 }
  0xe6   :  { %v135_v29 = vmul.f32 0.3275911, %v133_v27  ;;  %v161_v33 = vmul.f32 %v133_v27, %v133_v27  ;;  %v130_v4 = vsel %vm128_vm2, 1.0, %v397_v0 }
  0xe7   :  { %v134_v30 = vmul.f32 0.3275911, %v132_v28  ;;  %v160_v34 = vmul.f32 %v132_v28, %v132_v28 }
  0xe8   :  { %v137_v31 = vadd.f32 1.0, %v135_v29  ;;  %v163_v36 = vsub.f32 0.0, %v161_v33 }
  0xe9   :  { %v136_v32 = vadd.f32 1.0, %v134_v30  ;;  %v162_v39 = vsub.f32 0.0, %v160_v34 }
  0xea   :  { %365 = vrcp.f32 %v137_v31  ;;  %v166_v42 = vmul.f32 1.442695, %v163_v36 }
  0xeb   :  { %367 = vrcp.f32 %v136_v32  ;;  %v164_v45 = vmul.f32 1.442695, %v162_v39 }
  0xec   :  { %369 = vpow2.f32 %v166_v42 }
  0xed   :  { %371 = vpow2.f32 %v164_v45 }
  0xf4   :  { %v366_v35 = vpop.eup %365 }
  0xf5   :  { %v368_v37 = vpop.eup %367  ;;  %v143_v38 = vmul.f32 1.0614054, %v366_v35 }
  0xf6   :  { %v142_v40 = vmul.f32 1.0614054, %v368_v37  ;;  %v370_v58 = vpop.eup %369 }
  0xf7   :  { %v145_v41 = vadd.f32 -1.4531521, %v143_v38  ;;  %v372_v60 = vpop.eup %371 }
  0xf8   :  { %v144_v43 = vadd.f32 -1.4531521, %v142_v40 }
  0xf9   :  { %v147_v44 = vmul.f32 %v366_v35, %v145_v41 }
  0xfa   :  { %v146_v46 = vmul.f32 %v368_v37, %v144_v43 }
  0xfb   :  { %v149_v47 = vadd.f32 1.4214138, %v147_v44 }
  0xfc   :  { %v148_v48 = vadd.f32 1.4214138, %v146_v46 }
  0xfd   :  { %v151_v49 = vmul.f32 %v366_v35, %v149_v47 }
  0xfe   :  { %v150_v50 = vmul.f32 %v368_v37, %v148_v48 }
  0xff   :  { %v153_v51 = vadd.f32 -0.28449672, %v151_v49 }
 0x100   :  { %v152_v52 = vadd.f32 -0.28449672, %v150_v50 }
 0x101   :  { %v155_v53 = vmul.f32 %v366_v35, %v153_v51 }
 0x102   :  { %v154_v54 = vmul.f32 %v368_v37, %v152_v52 }
 0x103   :  { %v157_v55 = vadd.f32 0.2548296, %v155_v53 }
 0x104   :  { %v156_v56 = vadd.f32 0.2548296, %v154_v54 }
 0x105   :  { %v159_v57 = vmul.f32 %v366_v35, %v157_v55 }
 0x106   :  { %v158_v59 = vmul.f32 %v368_v37, %v156_v56 }
 0x107   :  { %v169_v61 = vmul.f32 %v370_v58, %v159_v57 }
 0x108   :  { %v168_v62 = vmul.f32 %v372_v60, %v158_v59 }
 0x109   :  { %v171_v63 = vsub.f32 1.0, %v169_v61 }
 0x10a   :  { %v170_v2 = vsub.f32 1.0, %v168_v62 }
 0x10b   :  { %v173_v3 = vmul.f32 %v171_v63, %v131_v1 }
 0x10c   :  { %v172_v5 = vmul.f32 %v170_v2, %v130_v4 }
 0x10d   :  { %v175_v6 = vadd.f32 1.0, %v173_v3 }
 0x10e   :  { %v174_v8 = vadd.f32 1.0, %v172_v5 }
 0x10f   :  { %v177_v11 = vmul.f32 %v175_v6, %v125_v9 }
 0x110   :  { %v176_v10 = vmul.f32 %v174_v8, %v124_v7 }
 0x112   :  { %334 = vmatprep.mubr.msk.f32.mxu1 %vm185_vm3, %v176_v10 }
 0x113   :  { %335 = vmatmul.mubr.msk.f32.vlgmr.msra.gmra.mrb[0].mxu1 %vm185_vm3, %v177_v11 }
 0x1e6   :  { %v336_v13 = vpop.f32.mrb[0].mxu1 }
 0x1e7   :  { %v264_v14 = vadd.f32 %v336_v13, %v288_v12  ;;  %v258_v15 = vpop.f32.mrb[1].mxu1 }
 0x1e8   :  { %v259_v16 = vadd.f32 %v288_v12, %v258_v15 }
 0x1e9   :  { %268 = vst.msk [vmem:[#allocation2 + $0x8] sm:$0xff] %vm42_vm0, %v264_v14 }
 0x1ea   :  { %267 = vst.msk [vmem:[#allocation2] sm:$0xff] %vm42_vm0, %v259_v16 }
 0x1eb   :  { %384 = shalt.err (!%p381_p4)
}
 0x1ec   :  { %s385_s25 = scalar_lea.hbm %s500_s5, 256 }
 0x1ed   :  { %p386_p5 = scmp.ne.s32.totalorder %s500_s5, %s385_s25  ;;  %p389_p6 = scmp.lt.u32.totalorder %s385_s25, %s500_s5 }
 0x1ef   :  { %p391_p7 = pnand %p389_p6, %p386_p5 }
 0x1f1   :  { %394 = shalt.err (!%p391_p7)
}
 0x1f2   :  { %s399_s30 = smov 128   ;;  %s400_s1 = smov 8  }
 0x1f3   :  { %280 = dma.vmem_to_hbm [thread:$0]  %s275_s22, 256, %s500_s5, [#allocation3], %s399_s30, %s399_s30, %s400_s1  }
 0x1f4   :  { %395 = dma.done.wait [#allocation3], 256  }
 0x1f5   :  { %396 = vsyncadd [#allocation3], 4294967040 }
 0x1f6   :  { %284 = vsyncpa [#allocation3], 1 }

</bundles_post_ra>
